<compile_context>
chip_gen: v5e
topology: v5e:2x2
jax: 0.10.0
libtpu: 0.0.40
codegen_flags: <defaults>
</compile_context>

<pallas_src>
import functools

import jax
import jax.numpy as jnp
import numpy as np
from jax import lax
from jax.experimental import pallas as pl
from jax.experimental.pallas import tpu as pltpu


def _dwsep_kernel(x_ref, dww_ref, pw_ref, fb_ref, cmask_ref, o_ref, *, W, use_mxu):
    # x_ref    : (1, C, L)   flattened NCHW input (L = H*W), one batch element
    # dww_ref  : (C, 9)      depthwise 3x3 weights, channel-major, tap = kh*3+kw
    # pw_ref   : (OC, C)     pointwise 1x1 weights
    # fb_ref   : (OC, 1)     fused bias  (pw @ dw_bias + pw_bias)
    # cmask_ref: (2, L)      {0,1} column masks: [w != 0, w != W-1]
    # o_ref    : (1, OC, L)  flattened output
    C = x_ref.shape[1]
    L = x_ref.shape[2]
    OC = o_ref.shape[1]

    x = x_ref[0].astype(jnp.float32)            # (C, L)
    dww = dww_ref[...].astype(jnp.float32)      # (C, 9)  -- loaded once (hoisted)
    cmask = cmask_ref[...]                      # (2, L)

    # Zero-padded flat copy: reads past either end of a row/image become zeros.
    zpad = jnp.zeros((C, W + 1), jnp.float32)
    xp = jnp.concatenate([zpad, x, zpad], axis=1)   # (C, L + 2W + 2)

    # --- depthwise 3x3: 9 lane-shifted multiply-accumulates on the VPU ---
    acc = jnp.zeros((C, L), jnp.float32)
    for dh in (-1, 0, 1):
        for dw in (-1, 0, 1):
            t = (dh + 1) * 3 + (dw + 1)
            start = (W + 1) + dh * W + dw           # static lane offset
            shifted = xp[:, start:start + L]        # zero-filled flat shift
            if dw == -1:                            # w-1 invalid at w == 0
                shifted = shifted * cmask[0:1, :]
            elif dw == 1:                           # w+1 invalid at w == W-1
                shifted = shifted * cmask[1:2, :]
            acc = acc + shifted * dww[:, t:t + 1]   # per-channel tap coefficient

    # --- pointwise 1x1 ---
    pw = pw_ref[...].astype(jnp.float32)            # (OC, C)
    if use_mxu:
        out = jnp.dot(pw, acc, preferred_element_type=jnp.float32)   # (OC, L)
    else:
        # Small C: per-channel scaled-plane sum on the VPU (MXU would be ~3% used).
        out = jnp.zeros((OC, L), jnp.float32)
        for c in range(C):
            out = out + pw[:, c:c + 1] * acc[c:c + 1, :]

    out = out + fb_ref[...].astype(jnp.float32)     # (OC, 1) broadcast over lanes
    o_ref[0] = out.astype(o_ref.dtype)


def depthwise_separable_conv(x_nchw, dw_weight, dw_bias, pw_weight, pw_bias):
    """x_nchw: (N, C, H, W); dw_weight: (C, 1, 3, 3); dw_bias: (C,);
    pw_weight: (OC, C, 1, 1); pw_bias: (OC,). Returns (N, OC, H, W)."""
    N, C, H, W = x_nchw.shape
    OC = pw_weight.shape[0]
    L = H * W

    # Free reshape (merges the two minor dims); no transpose, no spatial pad.
    x_flat = x_nchw.reshape(N, C, L)

    # Weight repacks (tiny).
    dww = dw_weight[:, 0, :, :].reshape(C, 9).astype(jnp.float32)        # (C, 9)
    pw_mat = pw_weight[:, :, 0, 0].astype(jnp.float32)                   # (OC, C)
    fused_bias = (pw_mat @ dw_bias.astype(jnp.float32)
                  + pw_bias.astype(jnp.float32)).reshape(OC, 1)          # (OC, 1)

    # {0,1} column-validity masks for the horizontal taps.
    col = jnp.arange(L, dtype=jnp.int32) % W
    cmask = jnp.stack([(col != 0), (col != W - 1)]).astype(jnp.float32)  # (2, L)

    use_mxu = C >= 64
    kernel = functools.partial(_dwsep_kernel, W=W, use_mxu=use_mxu)

    out_flat = pl.pallas_call(
        kernel,
        out_shape=jax.ShapeDtypeStruct((N, OC, L), x_nchw.dtype),
        grid_spec=pltpu.PrefetchScalarGridSpec(
            num_scalar_prefetch=0,
            grid=(N,),
            in_specs=[
                pl.BlockSpec((1, C, L), lambda n: (n, 0, 0)),
                pl.BlockSpec((C, 9), lambda n: (0, 0)),
                pl.BlockSpec((OC, C), lambda n: (0, 0)),
                pl.BlockSpec((OC, 1), lambda n: (0, 0)),
                pl.BlockSpec((2, L), lambda n: (0, 0)),
            ],
            out_specs=pl.BlockSpec((1, OC, L), lambda n: (n, 0, 0)),
        ),
        compiler_params=pltpu.CompilerParams(
            dimension_semantics=("parallel",)),
    )(x_flat, dww, pw_mat, fused_bias, cmask)

    # Free reshape back to NCHW (PyTorch convention).
    return out_flat.reshape(N, OC, H, W)


def _reference(x_nchw, dw_weight, dw_bias, pw_weight, pw_bias):
    C = x_nchw.shape[1]
    dn = ("NCHW", "OIHW", "NCHW")
    dw = lax.conv_general_dilated(
        x_nchw, dw_weight, window_strides=(1, 1), padding=((1, 1), (1, 1)),
        dimension_numbers=dn, feature_group_count=C)
    dw = dw + dw_bias[None, :, None, None]
    pw = lax.conv_general_dilated(
        dw, pw_weight, window_strides=(1, 1), padding=((0, 0), (0, 0)),
        dimension_numbers=dn)
    return pw + pw_bias[None, :, None, None]


if __name__ == "__main__":
    key = jax.random.PRNGKey(0)
    k_x, k_dww, k_dwb, k_pww, k_pwb = jax.random.split(key, 5)

    N, C, H, W = 2, 4, 16, 16
    OC = 8

    x = jax.random.normal(k_x, (N, C, H, W), jnp.float32)
    dw_weight = jax.random.normal(k_dww, (C, 1, 3, 3), jnp.float32) * 0.1
    dw_bias = jax.random.normal(k_dwb, (C,), jnp.float32) * 0.1
    pw_weight = jax.random.normal(k_pww, (OC, C, 1, 1), jnp.float32) * 0.1
    pw_bias = jax.random.normal(k_pwb, (OC,), jnp.float32) * 0.1

    out = depthwise_separable_conv(x, dw_weight, dw_bias, pw_weight, pw_bias)
    out = jax.block_until_ready(out)

    ref = jax.block_until_ready(
        _reference(x, dw_weight, dw_bias, pw_weight, pw_bias))
    np.testing.assert_allclose(np.asarray(out), np.asarray(ref),
                               rtol=1e-4, atol=1e-4)
    print("KERNEL_OK")
</pallas_src>

<mosaic_0001>
module attributes {stable_mosaic.version = 11 : i64} {
  func.func @_dwsep_kernel(%arg0: i32, %arg1: memref<1x4x256xf32, #tpu.memory_space<vmem>>, %arg2: memref<4x9xf32, #tpu.memory_space<vmem>>, %arg3: memref<8x4xf32, #tpu.memory_space<vmem>>, %arg4: memref<8x1xf32, #tpu.memory_space<vmem>>, %arg5: memref<2x256xf32, #tpu.memory_space<vmem>>, %arg6: memref<1x8x256xf32, #tpu.memory_space<vmem>>) attributes {dimension_semantics = [#tpu.dimension_semantics<parallel>], iteration_bounds = array<i64: 2>, scalar_prefetch = 0 : i64, scratch_operands = 0 : i64, tpu.core_type = #tpu.core_type<tc>, window_params = [{transform_indices = @transform_0, window_bounds = array<i64: 1, 4, 256>}, {pipeline_mode = #tpu.pipeline_mode<synchronous>, transform_indices = @transform_1, window_bounds = array<i64: 4, 9>}, {pipeline_mode = #tpu.pipeline_mode<synchronous>, transform_indices = @transform_2, window_bounds = array<i64: 8, 4>}, {pipeline_mode = #tpu.pipeline_mode<synchronous>, transform_indices = @transform_3, window_bounds = array<i64: 8, 1>}, {pipeline_mode = #tpu.pipeline_mode<synchronous>, transform_indices = @transform_4, window_bounds = array<i64: 2, 256>}, {transform_indices = @transform_5, window_bounds = array<i64: 1, 8, 256>}]} {
    %c0 = arith.constant 0 : index
    %c0_0 = arith.constant 0 : index
    %c0_1 = arith.constant 0 : index
    %0 = vector.load %arg1[%c0, %c0_0, %c0_1] : memref<1x4x256xf32, #tpu.memory_space<vmem>>, vector<1x4x256xf32>
    %1 = vector.shape_cast %0 : vector<1x4x256xf32> to vector<4x256xf32>
    %c0_2 = arith.constant 0 : index
    %c0_3 = arith.constant 0 : index
    %2 = vector.load %arg2[%c0_2, %c0_3] : memref<4x9xf32, #tpu.memory_space<vmem>>, vector<4x9xf32>
    %c0_4 = arith.constant 0 : index
    %c0_5 = arith.constant 0 : index
    %3 = vector.load %arg5[%c0_4, %c0_5] : memref<2x256xf32, #tpu.memory_space<vmem>>, vector<2x256xf32>
    %cst = arith.constant 0.000000e+00 : f32
    %4 = vector.broadcast %cst : f32 to vector<4x17xf32>
    %5 = tpu.concatenate %4, %1, %4 in 1 : vector<4x17xf32>, vector<4x256xf32>, vector<4x17xf32> -> vector<4x290xf32>
    %cst_6 = arith.constant 0.000000e+00 : f32
    %6 = vector.broadcast %cst_6 : f32 to vector<4x256xf32>
    %7 = vector.extract_strided_slice %5 {offsets = [0, 0], sizes = [4, 256], strides = [1, 1]} : vector<4x290xf32> to vector<4x256xf32>
    %8 = vector.extract_strided_slice %3 {offsets = [0, 0], sizes = [1, 256], strides = [1, 1]} : vector<2x256xf32> to vector<1x256xf32>
    %9 = vector.broadcast %8 : vector<1x256xf32> to vector<4x256xf32>
    %10 = arith.mulf %7, %9 : vector<4x256xf32>
    %11 = vector.extract_strided_slice %2 {offsets = [0, 0], sizes = [4, 1], strides = [1, 1]} : vector<4x9xf32> to vector<4x1xf32>
    %12 = vector.broadcast %11 : vector<4x1xf32> to vector<4x256xf32>
    %13 = arith.mulf %10, %12 : vector<4x256xf32>
    %14 = arith.addf %6, %13 : vector<4x256xf32>
    %15 = vector.extract_strided_slice %5 {offsets = [0, 1], sizes = [4, 256], strides = [1, 1]} : vector<4x290xf32> to vector<4x256xf32>
    %16 = vector.extract_strided_slice %2 {offsets = [0, 1], sizes = [4, 1], strides = [1, 1]} : vector<4x9xf32> to vector<4x1xf32>
    %17 = vector.broadcast %16 : vector<4x1xf32> to vector<4x256xf32>
    %18 = arith.mulf %15, %17 : vector<4x256xf32>
    %19 = arith.addf %14, %18 : vector<4x256xf32>
    %20 = vector.extract_strided_slice %5 {offsets = [0, 2], sizes = [4, 256], strides = [1, 1]} : vector<4x290xf32> to vector<4x256xf32>
    %21 = vector.extract_strided_slice %3 {offsets = [1, 0], sizes = [1, 256], strides = [1, 1]} : vector<2x256xf32> to vector<1x256xf32>
    %22 = vector.broadcast %21 : vector<1x256xf32> to vector<4x256xf32>
    %23 = arith.mulf %20, %22 : vector<4x256xf32>
    %24 = vector.extract_strided_slice %2 {offsets = [0, 2], sizes = [4, 1], strides = [1, 1]} : vector<4x9xf32> to vector<4x1xf32>
    %25 = vector.broadcast %24 : vector<4x1xf32> to vector<4x256xf32>
    %26 = arith.mulf %23, %25 : vector<4x256xf32>
    %27 = arith.addf %19, %26 : vector<4x256xf32>
    %28 = vector.extract_strided_slice %5 {offsets = [0, 16], sizes = [4, 256], strides = [1, 1]} : vector<4x290xf32> to vector<4x256xf32>
    %29 = vector.extract_strided_slice %3 {offsets = [0, 0], sizes = [1, 256], strides = [1, 1]} : vector<2x256xf32> to vector<1x256xf32>
    %30 = vector.broadcast %29 : vector<1x256xf32> to vector<4x256xf32>
    %31 = arith.mulf %28, %30 : vector<4x256xf32>
    %32 = vector.extract_strided_slice %2 {offsets = [0, 3], sizes = [4, 1], strides = [1, 1]} : vector<4x9xf32> to vector<4x1xf32>
    %33 = vector.broadcast %32 : vector<4x1xf32> to vector<4x256xf32>
    %34 = arith.mulf %31, %33 : vector<4x256xf32>
    %35 = arith.addf %27, %34 : vector<4x256xf32>
    %36 = vector.extract_strided_slice %5 {offsets = [0, 17], sizes = [4, 256], strides = [1, 1]} : vector<4x290xf32> to vector<4x256xf32>
    %37 = vector.extract_strided_slice %2 {offsets = [0, 4], sizes = [4, 1], strides = [1, 1]} : vector<4x9xf32> to vector<4x1xf32>
    %38 = vector.broadcast %37 : vector<4x1xf32> to vector<4x256xf32>
    %39 = arith.mulf %36, %38 : vector<4x256xf32>
    %40 = arith.addf %35, %39 : vector<4x256xf32>
    %41 = vector.extract_strided_slice %5 {offsets = [0, 18], sizes = [4, 256], strides = [1, 1]} : vector<4x290xf32> to vector<4x256xf32>
    %42 = vector.extract_strided_slice %3 {offsets = [1, 0], sizes = [1, 256], strides = [1, 1]} : vector<2x256xf32> to vector<1x256xf32>
    %43 = vector.broadcast %42 : vector<1x256xf32> to vector<4x256xf32>
    %44 = arith.mulf %41, %43 : vector<4x256xf32>
    %45 = vector.extract_strided_slice %2 {offsets = [0, 5], sizes = [4, 1], strides = [1, 1]} : vector<4x9xf32> to vector<4x1xf32>
    %46 = vector.broadcast %45 : vector<4x1xf32> to vector<4x256xf32>
    %47 = arith.mulf %44, %46 : vector<4x256xf32>
    %48 = arith.addf %40, %47 : vector<4x256xf32>
    %49 = vector.extract_strided_slice %5 {offsets = [0, 32], sizes = [4, 256], strides = [1, 1]} : vector<4x290xf32> to vector<4x256xf32>
    %50 = vector.extract_strided_slice %3 {offsets = [0, 0], sizes = [1, 256], strides = [1, 1]} : vector<2x256xf32> to vector<1x256xf32>
    %51 = vector.broadcast %50 : vector<1x256xf32> to vector<4x256xf32>
    %52 = arith.mulf %49, %51 : vector<4x256xf32>
    %53 = vector.extract_strided_slice %2 {offsets = [0, 6], sizes = [4, 1], strides = [1, 1]} : vector<4x9xf32> to vector<4x1xf32>
    %54 = vector.broadcast %53 : vector<4x1xf32> to vector<4x256xf32>
    %55 = arith.mulf %52, %54 : vector<4x256xf32>
    %56 = arith.addf %48, %55 : vector<4x256xf32>
    %57 = vector.extract_strided_slice %5 {offsets = [0, 33], sizes = [4, 256], strides = [1, 1]} : vector<4x290xf32> to vector<4x256xf32>
    %58 = vector.extract_strided_slice %2 {offsets = [0, 7], sizes = [4, 1], strides = [1, 1]} : vector<4x9xf32> to vector<4x1xf32>
    %59 = vector.broadcast %58 : vector<4x1xf32> to vector<4x256xf32>
    %60 = arith.mulf %57, %59 : vector<4x256xf32>
    %61 = arith.addf %56, %60 : vector<4x256xf32>
    %62 = vector.extract_strided_slice %5 {offsets = [0, 34], sizes = [4, 256], strides = [1, 1]} : vector<4x290xf32> to vector<4x256xf32>
    %63 = vector.extract_strided_slice %3 {offsets = [1, 0], sizes = [1, 256], strides = [1, 1]} : vector<2x256xf32> to vector<1x256xf32>
    %64 = vector.broadcast %63 : vector<1x256xf32> to vector<4x256xf32>
    %65 = arith.mulf %62, %64 : vector<4x256xf32>
    %66 = vector.extract_strided_slice %2 {offsets = [0, 8], sizes = [4, 1], strides = [1, 1]} : vector<4x9xf32> to vector<4x1xf32>
    %67 = vector.broadcast %66 : vector<4x1xf32> to vector<4x256xf32>
    %68 = arith.mulf %65, %67 : vector<4x256xf32>
    %69 = arith.addf %61, %68 : vector<4x256xf32>
    %c0_7 = arith.constant 0 : index
    %c0_8 = arith.constant 0 : index
    %70 = vector.load %arg3[%c0_7, %c0_8] : memref<8x4xf32, #tpu.memory_space<vmem>>, vector<8x4xf32>
    %cst_9 = arith.constant 0.000000e+00 : f32
    %71 = vector.broadcast %cst_9 : f32 to vector<8x256xf32>
    %72 = vector.extract_strided_slice %70 {offsets = [0, 0], sizes = [8, 1], strides = [1, 1]} : vector<8x4xf32> to vector<8x1xf32>
    %73 = vector.extract_strided_slice %69 {offsets = [0, 0], sizes = [1, 256], strides = [1, 1]} : vector<4x256xf32> to vector<1x256xf32>
    %74 = vector.broadcast %72 : vector<8x1xf32> to vector<8x256xf32>
    %75 = vector.broadcast %73 : vector<1x256xf32> to vector<8x256xf32>
    %76 = arith.mulf %74, %75 : vector<8x256xf32>
    %77 = arith.addf %71, %76 : vector<8x256xf32>
    %78 = vector.extract_strided_slice %70 {offsets = [0, 1], sizes = [8, 1], strides = [1, 1]} : vector<8x4xf32> to vector<8x1xf32>
    %79 = vector.extract_strided_slice %69 {offsets = [1, 0], sizes = [1, 256], strides = [1, 1]} : vector<4x256xf32> to vector<1x256xf32>
    %80 = vector.broadcast %78 : vector<8x1xf32> to vector<8x256xf32>
    %81 = vector.broadcast %79 : vector<1x256xf32> to vector<8x256xf32>
    %82 = arith.mulf %80, %81 : vector<8x256xf32>
    %83 = arith.addf %77, %82 : vector<8x256xf32>
    %84 = vector.extract_strided_slice %70 {offsets = [0, 2], sizes = [8, 1], strides = [1, 1]} : vector<8x4xf32> to vector<8x1xf32>
    %85 = vector.extract_strided_slice %69 {offsets = [2, 0], sizes = [1, 256], strides = [1, 1]} : vector<4x256xf32> to vector<1x256xf32>
    %86 = vector.broadcast %84 : vector<8x1xf32> to vector<8x256xf32>
    %87 = vector.broadcast %85 : vector<1x256xf32> to vector<8x256xf32>
    %88 = arith.mulf %86, %87 : vector<8x256xf32>
    %89 = arith.addf %83, %88 : vector<8x256xf32>
    %90 = vector.extract_strided_slice %70 {offsets = [0, 3], sizes = [8, 1], strides = [1, 1]} : vector<8x4xf32> to vector<8x1xf32>
    %91 = vector.extract_strided_slice %69 {offsets = [3, 0], sizes = [1, 256], strides = [1, 1]} : vector<4x256xf32> to vector<1x256xf32>
    %92 = vector.broadcast %90 : vector<8x1xf32> to vector<8x256xf32>
    %93 = vector.broadcast %91 : vector<1x256xf32> to vector<8x256xf32>
    %94 = arith.mulf %92, %93 : vector<8x256xf32>
    %95 = arith.addf %89, %94 : vector<8x256xf32>
    %c0_10 = arith.constant 0 : index
    %c0_11 = arith.constant 0 : index
    %96 = vector.load %arg4[%c0_10, %c0_11] : memref<8x1xf32, #tpu.memory_space<vmem>>, vector<8x1xf32>
    %97 = vector.broadcast %96 : vector<8x1xf32> to vector<8x256xf32>
    %98 = arith.addf %95, %97 : vector<8x256xf32>
    %c0_12 = arith.constant 0 : index
    %c0_13 = arith.constant 0 : index
    %c0_14 = arith.constant 0 : index
    %99 = vector.load %arg6[%c0_12, %c0_13, %c0_14] : memref<1x8x256xf32, #tpu.memory_space<vmem>>, vector<1x8x256xf32>
    %100 = vector.shape_cast %99 : vector<1x8x256xf32> to vector<8x256xf32>
    %101 = vector.shape_cast %98 : vector<8x256xf32> to vector<1x8x256xf32>
    tpu.vector_store %arg6[%c0_12, %c0_13, %c0_14], %101 {strides = array<i32>} : memref<1x8x256xf32, #tpu.memory_space<vmem>>, vector<1x8x256xf32>,
    return
  }
  func.func @transform_0(%arg0: i32) -> (i32, i32, i32) {
    %c0_i32 = arith.constant 0 : i32
    %c0_i32_0 = arith.constant 0 : i32
    %c0_i32_1 = arith.constant 0 : i32
    return %arg0, %c0_i32, %c0_i32_0 : i32, i32, i32
  }
  func.func @transform_1(%arg0: i32) -> (i32, i32) {
    %c0_i32 = arith.constant 0 : i32
    %c0_i32_0 = arith.constant 0 : i32
    %c0_i32_1 = arith.constant 0 : i32
    return %c0_i32, %c0_i32_0 : i32, i32
  }
  func.func @transform_2(%arg0: i32) -> (i32, i32) {
    %c0_i32 = arith.constant 0 : i32
    %c0_i32_0 = arith.constant 0 : i32
    %c0_i32_1 = arith.constant 0 : i32
    return %c0_i32, %c0_i32_0 : i32, i32
  }
  func.func @transform_3(%arg0: i32) -> (i32, i32) {
    %c0_i32 = arith.constant 0 : i32
    %c0_i32_0 = arith.constant 0 : i32
    %c0_i32_1 = arith.constant 0 : i32
    return %c0_i32, %c0_i32_0 : i32, i32
  }
  func.func @transform_4(%arg0: i32) -> (i32, i32) {
    %c0_i32 = arith.constant 0 : i32
    %c0_i32_0 = arith.constant 0 : i32
    %c0_i32_1 = arith.constant 0 : i32
    return %c0_i32, %c0_i32_0 : i32, i32
  }
  func.func @transform_5(%arg0: i32) -> (i32, i32, i32) {
    %c0_i32 = arith.constant 0 : i32
    %c0_i32_0 = arith.constant 0 : i32
    %c0_i32_1 = arith.constant 0 : i32
    return %arg0, %c0_i32, %c0_i32_0 : i32, i32, i32
  }
}

</mosaic_0001>

<bundles_post_ra>
// kernel: tpu_custom_call.1
= control target key start
LH: loop header
LB: loop body
LE: loop exit
PB: predicated region body
PF: predicated region fallthrough
CT: control target
= control target key end

     0   :  { %10 = vsyncpa [#allocation3], 0  ;;  %s1083_s0 = inlined_call_operand.vmem [shape: f32[2,4,256], index: 0, kind: input, shape index: {}]   ;;  %s1084_s1 = inlined_call_operand.vmem [shape: f32[4,9], index: 1, kind: input, shape index: {}]   ;;  %s1085_s2 = inlined_call_operand.vmem [shape: f32[8,4], index: 2, kind: input, shape index: {}]   ;;  %s1086_s3 = inlined_call_operand.vmem [shape: f32[8,1], index: 3, kind: input, shape index: {}]   ;;  %s1087_s4 = inlined_call_operand.hbm [shape: f32[2,256], index: 4, kind: input, shape index: {}]   ;;  %s1088_s5 = inlined_call_operand.hbm [shape: f32[2,8,256], index: 5, kind: output, shape index: {}]  }
   0x1   :  { %11 = vsyncpa [#allocation4], 0 }
   0x2   :  { %13 = vsyncpa [#allocation4 + $0x1], 0  ;;  %s924_s18 = smov 0   ;;  %s926_s19 = smov 0  }
   0x3   :  { %s928_s20 = smov 0   ;;  %s930_s21 = smov 0  }
   0x4 LB: > { %s945_s22 = sadd.s32 4294967295, %s868_s21   ;;  %s668_s23 = sadd.s32 4294967294, %s868_s21   ;;  %s868_s21 = sphi %s930_s21, %s1094_s21   ;;  %s864_s20 = sphi %s928_s20, %s1093_s20   ;;  %s860_s19 = sphi %s926_s19, %s1092_s19   ;;  %s856_s18 = sphi %s924_s18, %s1091_s18  }
   0x5   : > { %s949_s24 = sadd.s32 1, %s868_s21   ;;  %s136_s25 = sadd.s32 1, %s864_s20 }
   0x6   : > { %s133_s26 = ssub.s32 %s868_s21, %s949_s24  ;;  %p146_p0 = scmp.ne.s32.totalorder %s864_s20, %s860_s19 }
   0x7   : > { %p134_p1 = scmp.eq.s32.totalorder %s133_s26, 0  ;;  %p147_p2 = scmp.eq.s32.totalorder %s945_s22, 1 }
   0x8   : > { %p152_p3 = scmp.ne.s32.totalorder %s860_s19, %s856_s18  ;;  %p153_p4 = scmp.eq.s32.totalorder %s668_s23, 1 }
   0x9   : > { %s960_s27 = scalar_select %p134_p1, %s864_s20, %s136_s25  }
   0xa   : > { %p962_p5 = por %p147_p2, %p146_p0  ;;  %p966_p6 = por %p153_p4, %p152_p3 }
   0xb   : > { %p669_p7 = scmp.ge.s32.totalorder %s868_s21, 1  ;;  %p160_p8 = scmp.lt.s32.totalorder %s868_s21, 3 }
   0xc   : > { %p698_p9 = scmp.eq.s32.totalorder %s945_s22, 0  ;;  %s181_s7 = sshll.u32 %s1087_s4, 4  ;;  %s182_s7 = int_to_ptr.hbm [resolvable:$true] %s181_s7 }
   0xd   : > { %p161_p10 = pnand %p669_p7, %p160_p8  ;;  %s870_s8 = smov [#allocation2]  }
   0xe   : > { %s183_s9 = sshll.u32 %s870_s8, 4  ;;  %s184_s9 = int_to_ptr.vmem [resolvable:$true] %s183_s9 }
   0xf   : > { %p690_p11 = pneg %p161_p10  ;;  %204 = sbr.rel (%p161_p10) target bundleno = 364 (0x16c), region = 40 }
  0x11   : > { %p691_p12 = pnand %p698_p9, %p690_p11 }
  0x13   : > { %693 = dma.hbm_to_vmem [thread:$0]  (!%p691_p12), %s182_s7, 64, %s184_s9, [#allocation3]  }
  0x14   : > { %847 = dma.done.wait (%p698_p9), [#allocation3], 64  }
  0x15   : > { %849 = vsyncadd (%p698_p9), [#allocation3], 4294967232  ;;  %p233_p13 = scmp.lt.s32.totalorder %s945_s22, 1  ;;  %v871_v0 = vmov 0   ;;  %v872_v1 = vmov 4   ;;  %v873_v2 = vmov 2  }
  0x16   : > { %757 = vset.pattern.permute.xlu1 %v871_v0  ;;  %761 = vset.pattern.permute.xlu2 %v872_v1  ;;  %v239_v4 = vld [vmem:[%s1084_s1] sm:$0xf]  ;;  %v240_v5 = vld [vmem:[#allocation2] sm:$0xf]  ;;  %s874_s17 = smov 2   ;;  %v875_v10 = vmov 1  }
  0x17   : > { %s234_s10 = scalar_select %p233_p13, %s945_s22, 1  ;;  %759 = vset.pattern.permute.xlu0 %v873_v2  ;;  %267 = vperm.xlu1 %757, %v239_v4   ;;  %v298_v6 = vperm.slane %v240_v5, 3  ;;  %v257_v8 = vperm.slane %v240_v5, 0  ;;  %v297_v12 = vperm.slane %v240_v5, 1  ;;  %v878_v15 = vmov 3  }
  0x18   : > { %s876_s23 = smov 17   ;;  %s877_s25 = smov 16   ;;  %v258_v16 = vperm.slane %v240_v5, 2  ;;  %v880_v18 = vmov 6   ;;  %v882_v19 = vmov 8   ;;  %v883_v20 = vmov 5  }
  0x19   : > { %s682_s11 = sshll.u32 %s234_s10, 3  ;;  %v302_v7 = vperm.slane %v298_v6, 1  ;;  %v261_v11 = vperm.slane %v257_v8, 0  ;;  %v301_v14 = vperm.slane %v297_v12, 1  ;;  %s879_s26 = smov 32   ;;  %v884_v21 = vmov 7  }
  0x1a   : > { %s237_s14 = scalar_lea.vmem %s1083_s0, %s682_s11  ;;  %v262_v17 = vperm.slane %v258_v16, 0  ;;  %s881_s30 = smov 18   ;;  %vm249_vm0 = vcmask 138240   ;;  %vm346_vm1 = vcmask 130048   ;;  %vm309_vm2 = vcmask 15360  }
  0x1b   : > { %v238_v3 = vld [vmem:[%s237_s14] sm:$0xff]  ;;  %307 = vrot.lane.b32.xlu2 %v302_v7, %s874_s17  ;;  %s885_s6 = smov 34   ;;  %s886_s7 = smov 127   ;;  %vm439_vm3 = vcmask 261120   ;;  %vm404_vm4 = vcmask 146432   ;;  %vm497_vm5 = vcmask 277504  }
  0x1c   : > { %242 = vst [vmem:[#allocation1] ss:$2 sm:$0xff] %v238_v3  ;;  %s887_s8 = smov 111   ;;  %s888_s9 = smov 95   ;;  %vm290_vm6 = vcmask 1039360   ;;  %vm333_vm7 = vcmask 1031168  }
  0x1d   : > { %s889_s10 = smov 126   ;;  %s890_s11 = smov 112   ;;  %vm370_vm8 = vcmask 916480   ;;  %vm428_vm9 = vcmask 900096   ;;  %vm393_vm10 = vcmask 908288   ;;  %vm463_vm11 = vcmask 785408  }
  0x1e   : > { %s891_s12 = smov 96   ;;  %s892_s13 = smov 110   ;;  %vm486_vm12 = vcmask 777216   ;;  %vm521_vm13 = vcmask 769024  }
  0x1f   : > { %758 = vset.pattern.permute.xlu1 %v875_v10  ;;  %s893_s14 = smov 94   ;;  %s822_s16 = scalar_lea.hbm %s1088_s5, 32 }
  0x20   : > { %275 = vperm.xlu1 %758, %v239_v4  }
  0x23   : > { %v243_v9 = vld.sshfl [vmem:[#allocation1] sm:$0xff pattern:$0x75316420]  ;;  %342 = vrot.lane.b32.xlu2 %v261_v11, %s877_s25  ;;  %v244_v13 = vld.sshfl [vmem:[#allocation1 + $0x8] sm:$0xff pattern:$0x75316420] }
  0x24   : > { %245 = vrot.lane.b32.xlu0 %v243_v9, %s876_s23 }
  0x28   : > { %305 = vrot.lane.b32.xlu1 %v301_v14, %s874_s17 }
  0x29   : > { %760 = vset.pattern.permute.xlu1 %v878_v15 }
  0x2b   : > { %378 = vperm.xlu2 %761, %v239_v4  }
  0x2c   : > { %247 = vrot.lane.b32.xlu0 %v244_v13, %s876_s23 }
  0x30   : > { %355 = vperm.xlu1 %760, %v239_v4  }
  0x33   : > { %435 = vrot.lane.b32.xlu2 %v261_v11, %s879_s26 }
  0x34   : > { %318 = vperm.xlu0 %759, %v239_v4   ;;  %763 = vset.pattern.permute.xlu2 %v880_v18 }
  0x38   : > { %402 = vrot.lane.b32.xlu1 %v302_v7, %s881_s30 }
  0x39   : > { %762 = vset.pattern.permute.xlu1 %v883_v20 }
  0x3b   : > { %448 = vperm.xlu2 %763, %v239_v4  }
  0x3c   : > { %344 = vrot.lane.b32.xlu0 %v262_v17, %s877_s25  ;;  %s230_s25 = sand.u32 1, %s860_s19  }
  0x3d   : > { %765 = vset.pattern.permute.xlu0 %v882_v19 }
  0x40   : > { %413 = vperm.xlu1 %762, %v239_v4  }
  0x43   : > { %764 = vset.pattern.permute.xlu2 %v884_v21 }
  0x44   : > { %400 = vrot.lane.b32.xlu0 %v301_v14, %s881_s30  ;;  %471 = vperm.xlu2 %764, %v239_v4   ;;  %s683_s30 = sshll.u32 %s945_s22, 4  ;;  %s581_s22 = scalar_lea.sflag [#allocation4], %s230_s25 }
  0x48   : > { %495 = vrot.lane.b32.xlu1 %v302_v7, %s885_s6 }
  0x49   : > { %768 = vset.pattern.permute.xlu1 %v873_v2 }
  0x4c   : > { %437 = vrot.lane.b32.xlu0 %v262_v17, %s879_s26  ;;  %766 = vset.pattern.permute.xlu2 %v871_v0  ;;  %s674_s26 = sshll.u32 %s230_s25, 4 }
  0x54   : > { %493 = vrot.lane.b32.xlu0 %v301_v14, %s885_s6 }
  0x5c   : > { %506 = vperm.xlu0 %765, %v239_v4  }
  0x64   : > { %767 = vset.pattern.permute.xlu0 %v875_v10 }
  0x75   : > { %v308_v22 = vpop.permute.xlu2 %307 }
  0x7d   : > { %v987_v23 = vpop.permute.xlu2 %342 }
  0x85   : > { %v379_v24 = vpop.permute.xlu2 %378 }
  0x89   : > { %v268_v25 = vpop.permute.xlu1 %267 }
  0x8d   : > { %v989_v26 = vpop.permute.xlu2 %435 }
  0x92   : > { %v276_v29 = vpop.permute.xlu1 %275 }
  0x95   : > { %v995_v32 = vpop.permute.xlu2 %448 }
  0x96   : > { %v246_v27 = vpop.permute.xlu0 %245 }
  0x97   : > { %v991_v28 = vsel %vm249_vm0, 0.0, %v246_v27 }
  0x98   : > { %v278_v30 = vmul.f32 %v276_v29, %v991_v28  ;;  %v263_v31 = vmul.f32 %v261_v11, %v991_v28  ;;  %v381_v46 = vmul.f32 %v379_v24, %v991_v28  ;;  %v351_v3 = vmul.f32 %v987_v23, %v991_v28 }
  0x99   : > { %v444_v19 = vmul.f32 %v989_v26, %v991_v28 }
  0x9a   : > { %284 = vrot.lane.b32.xlu2 %v278_v30, %s886_s7  ;;  %v997_v33 = vmul.f32 %v268_v25, %v263_v31  ;;  %v306_v39 = vpop.permute.xlu1 %305 }
  0x9b   : > { %v314_v49 = vmul.f32 %v306_v39, %v991_v28  ;;  %v310_v55 = vsel %vm309_vm2, %v306_v39, %v308_v22 }
  0x9e   : > { %v248_v34 = vpop.permute.xlu0 %247  ;;  %v472_v42 = vpop.permute.xlu2 %471 }
  0x9f   : > { %v999_v35 = vsel %vm249_vm0, %v246_v27, %v248_v34  ;;  %v1001_v36 = vsel %vm249_vm0, %v248_v34, 0.0  ;;  %v474_v53 = vmul.f32 %v472_v42, %v991_v28 }
  0xa0   : > { %v280_v37 = vmul.f32 %v276_v29, %v1001_v36  ;;  %v382_v38 = vmul.f32 %v379_v24, %v999_v35  ;;  %v279_v40 = vmul.f32 %v276_v29, %v999_v35  ;;  %v264_v41 = vmul.f32 %v262_v17, %v999_v35  ;;  %v528_v29 = vld [vmem:[%s1085_s2] sm:$0xff] }
  0xa1   : > { %v476_v45 = vmul.f32 %v472_v42, %v1001_v36  ;;  %v383_v47 = vmul.f32 %v379_v24, %v1001_v36  ;;  %v475_v51 = vmul.f32 %v472_v42, %v999_v35  ;;  %v316_v58 = vmul.f32 %v308_v22, %v1001_v36 }
  0xa2   : > { %288 = vrot.lane.b32.xlu0 %v280_v37, %s886_s7  ;;  %389 = vrot.lane.b32.xlu1 %v382_v38, %s887_s8  ;;  %v1007_v43 = vmul.f32 %v268_v25, %v264_v41  ;;  %v356_v48 = vpop.permute.xlu1 %355  ;;  %v315_v60 = vmul.f32 %v310_v55, %v999_v35  ;;  %v451_v25 = vmul.f32 %v995_v32, %v444_v19 }
  0xa3   : > { %286 = vrot.lane.b32.xlu2 %v279_v40, %s886_s7  ;;  %v358_v8 = vmul.f32 %v356_v48, %v351_v3 }
  0xa6   : > { %v319_v44 = vpop.permute.xlu0 %318 }
  0xa7   : > { %v321_v52 = vmul.f32 %v319_v44, %v314_v49  ;;  %v323_v61 = vmul.f32 %v319_v44, %v316_v58  ;;  %v322_v63 = vmul.f32 %v319_v44, %v315_v60 }
  0xaa   : > { %387 = vrot.lane.b32.xlu0 %v381_v46, %s887_s8  ;;  %484 = vrot.lane.b32.xlu1 %v476_v45, %s888_s9  ;;  %v403_v57 = vpop.permute.xlu1 %402 }
  0xab   : > { %391 = vrot.lane.b32.xlu2 %v383_v47, %s887_s8  ;;  %v411_v21 = vmul.f32 %v403_v57, %v1001_v36  ;;  %s592_s8 = scalar_lea.hbm %s1088_s5, %s683_s30 }
  0xae   : > { %v345_v50 = vpop.permute.xlu0 %344 }
  0xaf   : > { %v347_v54 = vsel %vm346_vm1, %v987_v23, %v345_v50  ;;  %v353_v1 = vmul.f32 %v345_v50, %v1001_v36 }
  0xb0   : > { %v352_v56 = vmul.f32 %v347_v54, %v999_v35 }
  0xb1   : > { %v360_v6 = vmul.f32 %v356_v48, %v353_v1 }
  0xb2   : > { %482 = vrot.lane.b32.xlu0 %v475_v51, %s888_s9  ;;  %327 = vrot.lane.b32.xlu1 %v321_v52, %s889_s10  ;;  %v359_v62 = vmul.f32 %v356_v48, %v352_v56  ;;  %v414_v4 = vpop.permute.xlu1 %413 }
  0xb3   : > { %480 = vrot.lane.b32.xlu2 %v474_v53, %s888_s9  ;;  %v418_v24 = vmul.f32 %v414_v4, %v411_v21  ;;  %s232_s9 = scalar_lea.vmem [#allocation5], %s674_s26 }
  0xb6   : > { %v401_v59 = vpop.permute.xlu0 %400 }
  0xb7   : > { %v405_v9 = vsel %vm404_vm4, %v401_v59, %v403_v57  ;;  %v409_v11 = vmul.f32 %v401_v59, %v991_v28 }
  0xb8   : > { %v410_v12 = vmul.f32 %v405_v9, %v999_v35 }
  0xb9   : > { %v416_v14 = vmul.f32 %v414_v4, %v409_v11 }
  0xba   : > { %331 = vrot.lane.b32.xlu1 %v323_v61, %s889_s10  ;;  %366 = vrot.lane.b32.xlu0 %v359_v62, %s890_s11  ;;  %v417_v16 = vmul.f32 %v414_v4, %v410_v12  ;;  %v496_v17 = vpop.permute.xlu1 %495 }
  0xbb   : > { %329 = vrot.lane.b32.xlu2 %v322_v63, %s889_s10  ;;  %v504_v34 = vmul.f32 %v496_v17, %v1001_v36  ;;  %s594_s10 = sshll.u32 %s232_s9, 4  ;;  %s595_s10 = int_to_ptr.vmem [resolvable:$true] %s594_s10 }
  0xbe   : > { %v438_v2 = vpop.permute.xlu0 %437 }
  0xbf   : > { %v440_v5 = vsel %vm439_vm3, %v989_v26, %v438_v2  ;;  %v446_v27 = vmul.f32 %v438_v2, %v1001_v36 }
  0xc0   : > { %v445_v7 = vmul.f32 %v440_v5, %v999_v35 }
  0xc1   : > { %v453_v30 = vmul.f32 %v995_v32, %v446_v27 }
  0xc2   : > { %368 = vrot.lane.b32.xlu1 %v360_v6, %s890_s11  ;;  %v452_v10 = vmul.f32 %v995_v32, %v445_v7 }
  0xc3   : > { %364 = vrot.lane.b32.xlu2 %v358_v8, %s890_s11  ;;  %s596_s11 = sshll.u32 %s592_s8, 4  ;;  %s597_s11 = int_to_ptr.hbm [resolvable:$true] %s596_s11 }
  0xc4   : > { %459 = vrot.lane.b32.xlu0 %v452_v10, %s891_s12 }
  0xc6   : > { %v494_v13 = vpop.permute.xlu0 %493 }
  0xc7   : > { %v498_v18 = vsel %vm497_vm5, %v494_v13, %v496_v17  ;;  %v502_v26 = vmul.f32 %v494_v13, %v991_v28  ;;  %v570_v28 = vld [vmem:[%s1086_s3] sm:$0xff] }
  0xc8   : > { %v503_v20 = vmul.f32 %v498_v18, %v999_v35 }
  0xca   : > { %422 = vrot.lane.b32.xlu1 %v416_v14, %s892_s13 }
  0xcb   : > { %424 = vrot.lane.b32.xlu2 %v417_v16, %s892_s13 }
  0xce   : > { %v507_v22 = vpop.permute.xlu0 %506 }
  0xcf   : > { %v510_v23 = vmul.f32 %v507_v22, %v503_v20  ;;  %v509_v31 = vmul.f32 %v507_v22, %v502_v26  ;;  %v511_v35 = vmul.f32 %v507_v22, %v504_v34 }
  0xd1   : > { %517 = vrot.lane.b32.xlu0 %v510_v23, %s893_s14 }
  0xd2   : > { %426 = vrot.lane.b32.xlu1 %v418_v24, %s892_s13 }
  0xd3   : > { %457 = vrot.lane.b32.xlu2 %v451_v25, %s891_s12 }
  0xd9   : > { %541 = vperm.xlu0 %767, %v528_v29  }
  0xda   : > { %461 = vrot.lane.b32.xlu1 %v453_v30, %s891_s12  ;;  %s816_s12 = sshra.s32 %s597_s11, 4  ;;  %s817_s12 = int_to_ptr.hbm [resolvable:$true] %s816_s12 }
  0xdb   : > { %515 = vrot.lane.b32.xlu2 %v509_v31, %s893_s14  ;;  %s818_s13 = scalar_lea.hbm %s817_s12, 16  ;;  %p823_p3 = scmp.lt.s32.totalorder %s817_s12, %s1088_s5 }
  0xdc   : > { %p819_p0 = scmp.ne.s32.totalorder %s817_s12, %s818_s13  ;;  %p824_p4 = scmp.lt.s32.totalorder %s822_s16, %s818_s13 }
  0xde   : > { %p820_p1 = pnand %p819_p0, %p962_p5  ;;  %p825_p7 = por %p824_p4, %p823_p3 }
  0xe0   : > { %p821_p2 = pneg %p820_p1 }
  0xe1   : > { %771 = vset.pattern.permute.xlu0 %v871_v0 }
  0xe2   : > { %519 = vrot.lane.b32.xlu1 %v511_v35, %s893_s14  ;;  %p826_p8 = pnand %p825_p7, %p821_p2 }
  0xe3   : > { %531 = vperm.xlu2 %766, %v528_v29  }
  0xea   : > { %551 = vperm.xlu1 %768, %v528_v29  }
  0xeb   : > { %769 = vset.pattern.permute.xlu2 %v878_v15 }
  0xec   : > { %561 = vperm.xlu2 %769, %v528_v29  }
  0xf2   : > { %770 = vset.pattern.permute.xlu1 %v871_v0 }
  0xf3   : > { %573 = vperm.xlu1 %770, %v570_v28  }
  0xf4   : > { %v285_v32 = vpop.permute.xlu2 %284 }
  0xfd   : > { %v287_v37 = vpop.permute.xlu2 %286 }
  0xfe   : > { %v291_v50 = vsel %vm290_vm6, %v285_v32, %v287_v37 }
  0xff   : > { %v295_v53 = vadd.f32 %v291_v50, %v997_v33 }
 0x105   : > { %v392_v38 = vpop.permute.xlu2 %391 }
 0x10d   : > { %v481_v39 = vpop.permute.xlu2 %480 }
 0x114   : > { %v390_v36 = vpop.permute.xlu1 %389  ;;  %v289_v41 = vpop.permute.xlu0 %288 }
 0x115   : > { %v330_v44 = vpop.permute.xlu2 %329  ;;  %v292_v56 = vsel %vm290_vm6, %v287_v37, %v289_v41  ;;  %v395_v6 = vsel %vm393_vm10, %v390_v36, %v392_v38 }
 0x116   : > { %v296_v60 = vadd.f32 %v292_v56, %v1007_v43 }
 0x11c   : > { %v485_v40 = vpop.permute.xlu1 %484  ;;  %v388_v45 = vpop.permute.xlu0 %387 }
 0x11d   : > { %v365_v15 = vpop.permute.xlu2 %364  ;;  %v394_v62 = vsel %vm393_vm10, %v388_v45, %v390_v36 }
 0x124   : > { %v328_v42 = vpop.permute.xlu1 %327  ;;  %v483_v47 = vpop.permute.xlu0 %482 }
 0x125   : > { %v425_v49 = vpop.permute.xlu2 %424  ;;  %v334_v52 = vsel %vm333_vm7, %v328_v42, %v330_v44  ;;  %v487_v16 = vsel %vm486_vm12, %v481_v39, %v483_v47  ;;  %v488_v20 = vsel %vm486_vm12, %v483_v47, %v485_v40 }
 0x126   : > { %v338_v55 = vadd.f32 %v334_v52, %v295_v53 }
 0x12c   : > { %v332_v46 = vpop.permute.xlu1 %331  ;;  %v367_v0 = vpop.permute.xlu0 %366 }
 0x12d   : > { %v371_v54 = vsel %vm370_vm8, %v365_v15, %v367_v0  ;;  %v335_v58 = vsel %vm333_vm7, %v330_v44, %v332_v46  ;;  %v458_v59 = vpop.permute.xlu2 %457 }
 0x12e   : > { %v375_v57 = vadd.f32 %v371_v54, %v338_v55  ;;  %v339_v3 = vadd.f32 %v335_v58, %v296_v60 }
 0x130   : > { %v398_v33 = vadd.f32 %v394_v62, %v375_v57 }
 0x134   : > { %v369_v48 = vpop.permute.xlu1 %368 }
 0x135   : > { %v372_v63 = vsel %vm370_vm8, %v367_v0, %v369_v48  ;;  %v516_v11 = vpop.permute.xlu2 %515 }
 0x136   : > { %v460_v1 = vpop.permute.xlu0 %459  ;;  %v376_v4 = vadd.f32 %v372_v63, %v339_v3 }
 0x137   : > { %v464_v7 = vsel %vm463_vm11, %v458_v59, %v460_v1 }
 0x138   : > { %v399_v10 = vadd.f32 %v395_v6, %v376_v4 }
 0x13c   : > { %v423_v51 = vpop.permute.xlu1 %422 }
 0x13d   : > { %v429_v2 = vsel %vm428_vm9, %v423_v51, %v425_v49  ;;  %v532_v24 = vpop.permute.xlu2 %531 }
 0x13e   : > { %v433_v5 = vadd.f32 %v429_v2, %v398_v33 }
 0x140   : > { %v468_v9 = vadd.f32 %v464_v7, %v433_v5 }
 0x142   : > { %v491_v17 = vadd.f32 %v487_v16, %v468_v9 }
 0x143   : > { %v518_v12 = vpop.permute.xlu0 %517 }
 0x144   : > { %v427_v61 = vpop.permute.xlu1 %426  ;;  %v522_v19 = vsel %vm521_vm13, %v516_v11, %v518_v12 }
 0x145   : > { %v430_v8 = vsel %vm428_vm9, %v425_v49, %v427_v61  ;;  %v526_v21 = vadd.f32 %v522_v19, %v491_v17 }
 0x146   : > { %v434_v14 = vadd.f32 %v430_v8, %v399_v10  ;;  %v562_v15 = vpop.permute.xlu2 %561 }
 0x147   : > { %v534_v26 = vperm.slane %v526_v21, 0  ;;  %v544_v30 = vperm.slane %v526_v21, 1  ;;  %v554_v37 = vperm.slane %v526_v21, 2  ;;  %v564_v44 = vperm.slane %v526_v21, 3 }
 0x149   : > { %v536_v36 = vmul.f32 %v534_v26, %v532_v24  ;;  %v566_v49 = vmul.f32 %v564_v44, %v562_v15 }
 0x14b   : > { %v542_v29 = vpop.permute.xlu0 %541 }
 0x14c   : > { %v462_v43 = vpop.permute.xlu1 %461  ;;  %v546_v35 = vmul.f32 %v544_v30, %v542_v29 }
 0x14d   : > { %v465_v13 = vsel %vm463_vm11, %v460_v1, %v462_v43 }
 0x14e   : > { %v469_v18 = vadd.f32 %v465_v13, %v434_v14  ;;  %v548_v45 = vadd.f32 %v546_v35, %v536_v36 }
 0x150   : > { %v492_v23 = vadd.f32 %v488_v20, %v469_v18 }
 0x154   : > { %v520_v22 = vpop.permute.xlu1 %519 }
 0x155   : > { %v523_v25 = vsel %vm521_vm13, %v518_v12, %v520_v22 }
 0x156   : > { %v527_v27 = vadd.f32 %v523_v25, %v492_v23 }
 0x158   : > { %v535_v31 = vperm.slane %v527_v27, 0  ;;  %v545_v34 = vperm.slane %v527_v27, 1  ;;  %v555_v38 = vperm.slane %v527_v27, 2  ;;  %v565_v46 = vperm.slane %v527_v27, 3 }
 0x15a   : > { %v537_v28 = vmul.f32 %v535_v31, %v532_v24  ;;  %v547_v32 = vmul.f32 %v545_v34, %v542_v29  ;;  %v567_v50 = vmul.f32 %v565_v46, %v562_v15 }
 0x15c   : > { %v552_v39 = vpop.permute.xlu1 %551  ;;  %v549_v40 = vadd.f32 %v547_v32, %v537_v28 }
 0x15d   : > { %v556_v41 = vmul.f32 %v554_v37, %v552_v39  ;;  %v557_v42 = vmul.f32 %v555_v38, %v552_v39 }
 0x15f   : > { %v558_v47 = vadd.f32 %v556_v41, %v548_v45  ;;  %v559_v48 = vadd.f32 %v557_v42, %v549_v40 }
 0x161   : > { %v568_v0 = vadd.f32 %v566_v49, %v558_v47  ;;  %v569_v51 = vadd.f32 %v567_v50, %v559_v48 }
 0x165   : > { %v574_v52 = vpop.permute.xlu1 %573 }
 0x166   : > { %v576_v53 = vadd.f32 %v574_v52, %v568_v0  ;;  %v577_v54 = vadd.f32 %v574_v52, %v569_v51 }
 0x168   : > { %578 = vst [vmem:[%s232_s9] sm:$0xff] %v576_v53 }
 0x169   : > { %579 = vst [vmem:[%s232_s9 + $0x8] sm:$0xff] %v577_v54 }
 0x16a   : > { %829 = shalt.err (!%p826_p8)
}
 0x16b   : > { %688 = dma.vmem_to_hbm [thread:$0]  (%p962_p5), %s595_s10, 256, %s597_s11, %s581_s22  }
 0x16c PF: > { %p700_p9 = scmp.ge.s32.totalorder %s868_s21, 2  ;;  %s608_s25 = sand.u32 1, %s856_s18  }
 0x16d   : > { %s609_s26 = scalar_lea.sflag [#allocation4], %s608_s25 }
 0x16e   : > { %p695_p10 = pnand %p700_p9, %p966_p6 }
 0x170   : > { %p696_p11 = pneg %p695_p10 }
 0x172   : > { %851 = dma.done.wait (%p696_p11), %s609_s26, 256  }
 0x173   : > { %853 = vsyncadd (%p696_p11), %s609_s26, 4294967040  ;;  %p16_p12 = scmp.ge.s32.totalorder %s949_s24, 4   ;;  %s1091_s18 = smov %s860_s19 }
 0x174   : > { %s1092_s19 = smov %s864_s20  ;;  %s1093_s20 = smov %s960_s27 }
 0x175   : > { %s1094_s21 = smov %s949_s24  ;;  %18 = sbr.rel (!%p16_p12) target bundleno = 4 (0x4), region = 80 }
 0x17a   :  { %615 = vsyncpa [#allocation3], 1 }
 0x17b   :  { %617 = vsyncpa [#allocation3 + $0x1], 1 }
 0x17c   :  { %618 = vsyncpa [#allocation4], 1 }
 0x17d   :  { %620 = vsyncpa [#allocation4 + $0x1], 1 }

</bundles_post_ra>
